<compile_context>
chip_gen: v7x
topology: tpu7x:2x2x1
jax: 0.10.0
libtpu: 0.0.40
codegen_flags: <defaults>
</compile_context>

<pallas_src>
import functools

import jax
import jax.numpy as jnp
from jax.experimental import pallas as pl
from jax.experimental.pallas import tpu as pltpu


def _round_up(x, m):
    return (x + m - 1) // m * m


def _proxy_nca_kernel(x_ref, p_ref, t_ref, loss_ref,
                      xn_ref, m_ref, l_ref, tgt_ref,
                      *, nb_classes, c_tile):
    """Per-row loss: lse_j(2*cos(x_i, p_j)) - 2*cos(x_i, p_{T_i}).

    Grid: (B tiles, C tiles); C is the inner (reduction) axis.
    """
    c_idx = pl.program_id(1)
    eps = 1e-12  # matches F.normalize default

    # ---- Per-B-tile init (first C step): normalize X once, reset accumulators.
    @pl.when(c_idx == 0)
    def _init():
        x = x_ref[...].astype(jnp.float32)                         # (Bt, Dp)
        xnorm = jnp.sqrt(jnp.sum(x * x, axis=-1, keepdims=True))
        # Fold the "2*" of the logits into the normalization (exact scale).
        xn_ref[...] = (x * (2.0 / jnp.maximum(xnorm, eps))).astype(xn_ref.dtype)
        m_ref[...] = jnp.full(m_ref.shape, -jnp.inf, dtype=m_ref.dtype)
        l_ref[...] = jnp.zeros(l_ref.shape, dtype=l_ref.dtype)
        tgt_ref[...] = jnp.zeros(tgt_ref.shape, dtype=tgt_ref.dtype)

    # ---- Normalize this proxy tile (f32 math, bf16 MXU operand).
    p = p_ref[...].astype(jnp.float32)                             # (Ct, Dp)
    pnorm = jnp.sqrt(jnp.sum(p * p, axis=-1, keepdims=True))
    pn = (p * (1.0 / jnp.maximum(pnorm, eps))).astype(jnp.bfloat16)

    # ---- logits tile = 2*cos, (Bt, Dp) x (Ct, Dp) contracted on Dp (no pn.T).
    logits = jax.lax.dot_general(
        xn_ref[...], pn,
        dimension_numbers=(((1,), (1,)), ((), ())),
        preferred_element_type=jnp.float32)                        # (Bt, Ct)

    # ---- Mask class-padding columns (exp underflows to 0, max unaffected).
    col = jax.lax.broadcasted_iota(jnp.int32, logits.shape, 1) + c_idx * c_tile
    logits = jnp.where(col < nb_classes, logits, -1e30)

    # ---- Target-column logit (labels are always < nb_classes, i.e. unmasked).
    t = t_ref[...]                                                 # (Bt, 1) int32
    tgt_ref[...] += jnp.sum(jnp.where(col == t, logits, 0.0),
                            axis=-1, keepdims=True)

    # ---- Online log-sum-exp merge.
    m_prev = m_ref[...]
    m_new = jnp.maximum(m_prev, jnp.max(logits, axis=-1, keepdims=True))
    alpha = jnp.exp(m_prev - m_new)                                # 0 on first step
    l_ref[...] = alpha * l_ref[...] + jnp.sum(jnp.exp(logits - m_new),
                                              axis=-1, keepdims=True)
    m_ref[...] = m_new

    # ---- Finalize per-row loss on the last C step.
    @pl.when(c_idx == pl.num_programs(1) - 1)
    def _finalize():
        lse = m_ref[...] + jnp.log(l_ref[...])
        loss_ref[...] = (lse - tgt_ref[...]).astype(loss_ref.dtype)


def proxy_nca_app_forward(X, T, P, nb_classes=None, *, b_tile=128, c_tile=1024):
    """Equivalent of ProxyNCApp(nb_classes, sz_embed).forward(X, T, P).

    X: (B, sz_embed) embeddings (any float dtype; kernel upcasts to f32).
    T: (B,) int labels in [0, nb_classes).
    P: (nb_classes_or_more, sz_embed) proxies; only the first nb_classes rows
       are used (matches `P = P[:self.nb_classes]`).
    """
    if nb_classes is None:
        nb_classes = P.shape[0]
    if P.shape[0] != nb_classes:
        P = P[:nb_classes]

    B, D = X.shape
    C = nb_classes

    # Tile sizes: Bt multiple of 8 (sublane), Ct multiple of 128 (lane / MXU).
    Bt = max(8, min(_round_up(b_tile, 8), _round_up(B, 8)))
    Ct = max(128, min(_round_up(c_tile, 128), _round_up(C, 128)))
    Dp = _round_up(D, 128)          # lane-dense feature dim (zero pad is exact)
    B_pad = _round_up(B, Bt)
    C_pad = _round_up(C, Ct)

    Xp = X if (D == Dp and B == B_pad) else jnp.pad(X, ((0, B_pad - B), (0, Dp - D)))
    Pp = P if (D == Dp and C == C_pad) else jnp.pad(P, ((0, C_pad - C), (0, Dp - D)))
    Tc = T.astype(jnp.int32).reshape(B, 1)
    if B_pad != B:
        Tc = jnp.pad(Tc, ((0, B_pad - B), (0, 0)))

    grid = (B_pad // Bt, C_pad // Ct)

    # VMEM budget (sized so double-buffering survives v7x's 64 MiB VMEM).
    p_item = jnp.dtype(Pp.dtype).itemsize
    x_item = jnp.dtype(Xp.dtype).itemsize
    est = (2 * Ct * Dp * p_item          # double-buffered P stream
           + 2 * Bt * Dp * x_item        # X block
           + Bt * Dp * 2                 # xn scratch (bf16)
           + 4 * Bt * Ct * 4             # logits tile + f32 temporaries
           + 16 * Bt * 4)                # accumulators / output / labels
    vmem_limit = int(min(max(2 * est, 32 << 20), 64 << 20))

    kernel = functools.partial(_proxy_nca_kernel, nb_classes=C, c_tile=Ct)

    per_row = pl.pallas_call(
        kernel,
        out_shape=jax.ShapeDtypeStruct((B_pad, 1), jnp.float32),
        grid_spec=pltpu.PrefetchScalarGridSpec(
            num_scalar_prefetch=0,
            grid=grid,
            in_specs=[
                pl.BlockSpec((Bt, Dp), lambda b, c: (b, 0)),   # X: resident per B tile
                pl.BlockSpec((Ct, Dp), lambda b, c: (c, 0)),   # P: streamed over C
                pl.BlockSpec((Bt, 1), lambda b, c: (b, 0)),    # labels
            ],
            out_specs=pl.BlockSpec((Bt, 1), lambda b, c: (b, 0)),
            scratch_shapes=[
                pltpu.VMEM((Bt, Dp), jnp.bfloat16),            # 2 * normalized X
                pltpu.VMEM((Bt, 1), jnp.float32),              # running max
                pltpu.VMEM((Bt, 1), jnp.float32),              # running sum-exp
                pltpu.VMEM((Bt, 1), jnp.float32),              # target logit
            ],
        ),
        compiler_params=pltpu.CompilerParams(
            dimension_semantics=("parallel", "arbitrary"),
            vmem_limit_bytes=vmem_limit,
        ),
    )(Xp, Pp, Tc)

    return jnp.mean(per_row[:B, 0])


if __name__ == "__main__":
    key = jax.random.PRNGKey(0)
    k_x, k_p, k_t = jax.random.split(key, 3)

    batch, nb_classes, sz_embed = 8, 16, 32
    X = jax.random.normal(k_x, (batch, sz_embed), dtype=jnp.float32)
    # Proxies (stand-in for the module's kaiming-initialized parameter).
    P = jax.random.normal(k_p, (nb_classes, sz_embed), dtype=jnp.float32)
    T = jax.random.randint(k_t, (batch,), 0, nb_classes, dtype=jnp.int32)

    loss = proxy_nca_app_forward(X, T, P, nb_classes=nb_classes)
    jax.block_until_ready(loss)
    print("KERNEL_OK")
</pallas_src>

<mosaic_0001>
module attributes {stable_mosaic.version = 11 : i64} {
  func.func @_proxy_nca_kernel(%arg0: i32, %arg1: i32, %arg2: memref<8x128xf32, #tpu.memory_space<vmem>>, %arg3: memref<128x128xf32, #tpu.memory_space<vmem>>, %arg4: memref<8x1xi32, #tpu.memory_space<vmem>>, %arg5: memref<8x1xf32, #tpu.memory_space<vmem>>, %arg6: memref<8x128xbf16, #tpu.memory_space<vmem>>, %arg7: memref<8x1xf32, #tpu.memory_space<vmem>>, %arg8: memref<8x1xf32, #tpu.memory_space<vmem>>, %arg9: memref<8x1xf32, #tpu.memory_space<vmem>>) attributes {dimension_semantics = [#tpu.dimension_semantics<parallel>, #tpu.dimension_semantics<arbitrary>], iteration_bounds = array<i64: 1, 1>, scalar_prefetch = 0 : i64, scratch_operands = 4 : i64, tpu.core_type = #tpu.core_type<tc>, window_params = [{transform_indices = @transform_0, window_bounds = array<i64: 8, 128>}, {transform_indices = @transform_1, window_bounds = array<i64: 128, 128>}, {transform_indices = @transform_2, window_bounds = array<i64: 8, 1>}, {transform_indices = @transform_3, window_bounds = array<i64: 8, 1>}]} {
    %c0_i32 = arith.constant 0 : i32
    %0 = arith.cmpi eq, %arg1, %c0_i32 : i32
    %1 = arith.extui %0 : i1 to i32
    %c0_i32_0 = arith.constant 0 : i32
    %2 = arith.cmpi ne, %1, %c0_i32_0 : i32
    scf.if %2 {
      %c0_28 = arith.constant 0 : index
      %c0_29 = arith.constant 0 : index
      %54 = vector.load %arg2[%c0_28, %c0_29] : memref<8x128xf32, #tpu.memory_space<vmem>>, vector<8x128xf32>
      %55 = arith.mulf %54, %54 : vector<8x128xf32>
      %cst_30 = arith.constant dense<0.000000e+00> : vector<8xf32>
      %56 = vector.multi_reduction <add>, %55, %cst_30 [1] : vector<8x128xf32> to vector<8xf32>
      %57 = vector.shape_cast %56 : vector<8xf32> to vector<8x1xf32>
      %58 = math.sqrt %57 : vector<8x1xf32>
      %cst_31 = arith.constant 9.99999996E-13 : f32
      %59 = vector.broadcast %cst_31 : f32 to vector<8x1xf32>
      %60 = arith.maximumf %58, %59 : vector<8x1xf32>
      %cst_32 = arith.constant 2.000000e+00 : f32
      %61 = vector.broadcast %cst_32 : f32 to vector<8x1xf32>
      %62 = arith.divf %61, %60 : vector<8x1xf32>
      %63 = vector.broadcast %62 : vector<8x1xf32> to vector<8x128xf32>
      %64 = arith.mulf %54, %63 : vector<8x128xf32>
      %65 = arith.truncf %64 : vector<8x128xf32> to vector<8x128xbf16>
      %c0_33 = arith.constant 0 : index
      %c0_34 = arith.constant 0 : index
      %66 = vector.load %arg6[%c0_33, %c0_34] : memref<8x128xbf16, #tpu.memory_space<vmem>>, vector<8x128xbf16>
      tpu.vector_store %arg6[%c0_33, %c0_34], %65 {strides = array<i32>} : memref<8x128xbf16, #tpu.memory_space<vmem>>, vector<8x128xbf16>,
      %cst_35 = arith.constant 0xFF800000 : f32
      %67 = vector.broadcast %cst_35 : f32 to vector<8x1xf32>
      %c0_36 = arith.constant 0 : index
      %c0_37 = arith.constant 0 : index
      %68 = vector.load %arg7[%c0_36, %c0_37] : memref<8x1xf32, #tpu.memory_space<vmem>>, vector<8x1xf32>
      tpu.vector_store %arg7[%c0_36, %c0_37], %67 {strides = array<i32>} : memref<8x1xf32, #tpu.memory_space<vmem>>, vector<8x1xf32>,
      %cst_38 = arith.constant 0.000000e+00 : f32
      %69 = vector.broadcast %cst_38 : f32 to vector<8x1xf32>
      %c0_39 = arith.constant 0 : index
      %c0_40 = arith.constant 0 : index
      %70 = vector.load %arg8[%c0_39, %c0_40] : memref<8x1xf32, #tpu.memory_space<vmem>>, vector<8x1xf32>
      tpu.vector_store %arg8[%c0_39, %c0_40], %69 {strides = array<i32>} : memref<8x1xf32, #tpu.memory_space<vmem>>, vector<8x1xf32>,
      %cst_41 = arith.constant 0.000000e+00 : f32
      %71 = vector.broadcast %cst_41 : f32 to vector<8x1xf32>
      %c0_42 = arith.constant 0 : index
      %c0_43 = arith.constant 0 : index
      %72 = vector.load %arg9[%c0_42, %c0_43] : memref<8x1xf32, #tpu.memory_space<vmem>>, vector<8x1xf32>
      tpu.vector_store %arg9[%c0_42, %c0_43], %71 {strides = array<i32>} : memref<8x1xf32, #tpu.memory_space<vmem>>, vector<8x1xf32>,
    } else {
    }
    %c0 = arith.constant 0 : index
    %c0_1 = arith.constant 0 : index
    %3 = vector.load %arg3[%c0, %c0_1] : memref<128x128xf32, #tpu.memory_space<vmem>>, vector<128x128xf32>
    %4 = arith.mulf %3, %3 : vector<128x128xf32>
    %cst = arith.constant dense<0.000000e+00> : vector<128xf32>
    %5 = vector.multi_reduction <add>, %4, %cst [1] : vector<128x128xf32> to vector<128xf32>
    %6 = vector.shape_cast %5 : vector<128xf32> to vector<128x1xf32>
    %7 = math.sqrt %6 : vector<128x1xf32>
    %cst_2 = arith.constant 9.99999996E-13 : f32
    %8 = vector.broadcast %cst_2 : f32 to vector<128x1xf32>
    %9 = arith.maximumf %7, %8 : vector<128x1xf32>
    %cst_3 = arith.constant 1.000000e+00 : f32
    %10 = vector.broadcast %cst_3 : f32 to vector<128x1xf32>
    %11 = arith.divf %10, %9 : vector<128x1xf32>
    %12 = vector.broadcast %11 : vector<128x1xf32> to vector<128x128xf32>
    %13 = arith.mulf %3, %12 : vector<128x128xf32>
    %14 = arith.truncf %13 : vector<128x128xf32> to vector<128x128xbf16>
    %c0_4 = arith.constant 0 : index
    %c0_5 = arith.constant 0 : index
    %15 = vector.load %arg6[%c0_4, %c0_5] : memref<8x128xbf16, #tpu.memory_space<vmem>>, vector<8x128xbf16>
    %cst_6 = arith.constant dense<0.000000e+00> : vector<8x128xf32>
    %16 = tpu.matmul %15, %14, %cst_6 {dimension_numbers = #tpu.dot_dimension_numbers<[1], [1], [0], [0], [0, 0, 1, 0], [], []>} : vector<8x128xbf16>, vector<128x128xbf16>, vector<8x128xf32> -> vector<8x128xf32>
    %17 = tpu.iota {dimensions = array<i32: 1>} : vector<8x128xi32>
    %c128_i32 = arith.constant 128 : i32
    %18 = arith.muli %arg1, %c128_i32 : i32
    %19 = vector.broadcast %18 : i32 to vector<8x128xi32>
    %20 = arith.addi %17, %19 : vector<8x128xi32>
    %c16_i32 = arith.constant 16 : i32
    %21 = vector.broadcast %c16_i32 : i32 to vector<8x128xi32>
    %22 = arith.cmpi slt, %20, %21 : vector<8x128xi32>
    %cst_7 = arith.constant -1.000000e+30 : f32
    %23 = vector.broadcast %cst_7 : f32 to vector<8x128xf32>
    %24 = arith.select %22, %16, %23 : vector<8x128xi1>, vector<8x128xf32>
    %c0_8 = arith.constant 0 : index
    %c0_9 = arith.constant 0 : index
    %25 = vector.load %arg4[%c0_8, %c0_9] : memref<8x1xi32, #tpu.memory_space<vmem>>, vector<8x1xi32>
    %c0_10 = arith.constant 0 : index
    %c0_11 = arith.constant 0 : index
    %26 = vector.load %arg9[%c0_10, %c0_11] : memref<8x1xf32, #tpu.memory_space<vmem>>, vector<8x1xf32>
    %27 = vector.broadcast %25 : vector<8x1xi32> to vector<8x128xi32>
    %28 = arith.cmpi eq, %20, %27 : vector<8x128xi32>
    %cst_12 = arith.constant 0.000000e+00 : f32
    %29 = vector.broadcast %cst_12 : f32 to vector<8x128xf32>
    %30 = arith.select %28, %24, %29 : vector<8x128xi1>, vector<8x128xf32>
    %cst_13 = arith.constant dense<0.000000e+00> : vector<8xf32>
    %31 = vector.multi_reduction <add>, %30, %cst_13 [1] : vector<8x128xf32> to vector<8xf32>
    %32 = vector.shape_cast %31 : vector<8xf32> to vector<8x1xf32>
    %33 = arith.addf %26, %32 : vector<8x1xf32>
    %c0_14 = arith.constant 0 : index
    %c0_15 = arith.constant 0 : index
    %34 = vector.load %arg9[%c0_14, %c0_15] : memref<8x1xf32, #tpu.memory_space<vmem>>, vector<8x1xf32>
    tpu.vector_store %arg9[%c0_14, %c0_15], %33 {strides = array<i32>} : memref<8x1xf32, #tpu.memory_space<vmem>>, vector<8x1xf32>,
    %c0_16 = arith.constant 0 : index
    %c0_17 = arith.constant 0 : index
    %35 = vector.load %arg7[%c0_16, %c0_17] : memref<8x1xf32, #tpu.memory_space<vmem>>, vector<8x1xf32>
    %cst_18 = arith.constant dense<0xFF800000> : vector<8xf32>
    %36 = vector.multi_reduction <maximumf>, %24, %cst_18 [1] : vector<8x128xf32> to vector<8xf32>
    %37 = vector.shape_cast %36 : vector<8xf32> to vector<8x1xf32>
    %38 = arith.maximumf %35, %37 : vector<8x1xf32>
    %39 = arith.subf %35, %38 : vector<8x1xf32>
    %40 = math.exp %39 : vector<8x1xf32>
    %c0_19 = arith.constant 0 : index
    %c0_20 = arith.constant 0 : index
    %41 = vector.load %arg8[%c0_19, %c0_20] : memref<8x1xf32, #tpu.memory_space<vmem>>, vector<8x1xf32>
    %42 = arith.mulf %40, %41 : vector<8x1xf32>
    %43 = vector.broadcast %38 : vector<8x1xf32> to vector<8x128xf32>
    %44 = arith.subf %24, %43 : vector<8x128xf32>
    %45 = math.exp %44 : vector<8x128xf32>
    %cst_21 = arith.constant dense<0.000000e+00> : vector<8xf32>
    %46 = vector.multi_reduction <add>, %45, %cst_21 [1] : vector<8x128xf32> to vector<8xf32>
    %47 = vector.shape_cast %46 : vector<8xf32> to vector<8x1xf32>
    %48 = arith.addf %42, %47 : vector<8x1xf32>
    %c0_22 = arith.constant 0 : index
    %c0_23 = arith.constant 0 : index
    %49 = vector.load %arg8[%c0_22, %c0_23] : memref<8x1xf32, #tpu.memory_space<vmem>>, vector<8x1xf32>
    tpu.vector_store %arg8[%c0_22, %c0_23], %48 {strides = array<i32>} : memref<8x1xf32, #tpu.memory_space<vmem>>, vector<8x1xf32>,
    %c0_24 = arith.constant 0 : index
    %c0_25 = arith.constant 0 : index
    %50 = vector.load %arg7[%c0_24, %c0_25] : memref<8x1xf32, #tpu.memory_space<vmem>>, vector<8x1xf32>
    tpu.vector_store %arg7[%c0_24, %c0_25], %38 {strides = array<i32>} : memref<8x1xf32, #tpu.memory_space<vmem>>, vector<8x1xf32>,
    %c0_i32_26 = arith.constant 0 : i32
    %51 = arith.cmpi eq, %arg1, %c0_i32_26 : i32
    %52 = arith.extui %51 : i1 to i32
    %c0_i32_27 = arith.constant 0 : i32
    %53 = arith.cmpi ne, %52, %c0_i32_27 : i32
    scf.if %53 {
      %c0_28 = arith.constant 0 : index
      %c0_29 = arith.constant 0 : index
      %54 = vector.load %arg7[%c0_28, %c0_29] : memref<8x1xf32, #tpu.memory_space<vmem>>, vector<8x1xf32>
      %c0_30 = arith.constant 0 : index
      %c0_31 = arith.constant 0 : index
      %55 = vector.load %arg8[%c0_30, %c0_31] : memref<8x1xf32, #tpu.memory_space<vmem>>, vector<8x1xf32>
      %56 = math.log %55 : vector<8x1xf32>
      %57 = arith.addf %54, %56 : vector<8x1xf32>
      %c0_32 = arith.constant 0 : index
      %c0_33 = arith.constant 0 : index
      %58 = vector.load %arg9[%c0_32, %c0_33] : memref<8x1xf32, #tpu.memory_space<vmem>>, vector<8x1xf32>
      %59 = arith.subf %57, %58 : vector<8x1xf32>
      %c0_34 = arith.constant 0 : index
      %c0_35 = arith.constant 0 : index
      %60 = vector.load %arg5[%c0_34, %c0_35] : memref<8x1xf32, #tpu.memory_space<vmem>>, vector<8x1xf32>
      tpu.vector_store %arg5[%c0_34, %c0_35], %59 {strides = array<i32>} : memref<8x1xf32, #tpu.memory_space<vmem>>, vector<8x1xf32>,
    } else {
    }
    return
  }
  func.func @transform_0(%arg0: i32, %arg1: i32) -> (i32, i32) {
    %c0_i32 = arith.constant 0 : i32
    %c0_i32_0 = arith.constant 0 : i32
    return %arg0, %c0_i32 : i32, i32
  }
  func.func @transform_1(%arg0: i32, %arg1: i32) -> (i32, i32) {
    %c0_i32 = arith.constant 0 : i32
    %c0_i32_0 = arith.constant 0 : i32
    return %arg1, %c0_i32 : i32, i32
  }
  func.func @transform_2(%arg0: i32, %arg1: i32) -> (i32, i32) {
    %c0_i32 = arith.constant 0 : i32
    %c0_i32_0 = arith.constant 0 : i32
    return %arg0, %c0_i32 : i32, i32
  }
  func.func @transform_3(%arg0: i32, %arg1: i32) -> (i32, i32) {
    %c0_i32 = arith.constant 0 : i32
    %c0_i32_0 = arith.constant 0 : i32
    return %arg0, %c0_i32 : i32, i32
  }
}

</mosaic_0001>

<bundles_post_ra>
// kernel: tpu_custom_call.1
= control target key start
LH: loop header
LB: loop body
LE: loop exit
PB: predicated region body
PF: predicated region fallthrough
CT: control target
= control target key end

     0   :  { %8 = vsyncpa [#allocation7], 0  ;;  %s536_s12 = smov [#allocation6]   ;;  %s797_s0 = inlined_call_operand.vmem [shape: f32[8,128], index: 0, kind: input, shape index: {}]   ;;  %s798_s1 = inlined_call_operand.hbm [shape: f32[128,128], index: 1, kind: input, shape index: {}]   ;;  %s799_s2 = inlined_call_operand.vmem [shape: s32[8,1], index: 2, kind: input, shape index: {}]   ;;  %s800_s3 = inlined_call_operand.vmem [shape: f32[8,1], index: 3, kind: output, shape index: {}]  }
   0x1   :  { %s16_s13 = sshll.u32 %s536_s12, 4  ;;  %s512_s16 = scalar_lea.hbm %s798_s1, 2048  ;;  %s17_s13 = int_to_ptr.vmem [resolvable:$true] %s16_s13 }
   0x2   :  { %p513_p0 = scmp.ne.s32.totalorder %s798_s1, %s512_s16  ;;  %p516_p1 = scmp.lt.u32.totalorder %s512_s16, %s798_s1 }
   0x4   :  { %p518_p2 = pnand %p516_p1, %p513_p0 }
   0x6   :  { %521 = shalt.err (!%p518_p2)
}
   0x7   :  { %s522_s21 = scalar_lea.vmem %s17_s13, 2048  ;;  %p527_p4 = scmp.lt.s32.totalorder %s17_s13, %s17_s13 }
   0x8   :  { %p523_p3 = scmp.ne.s32.totalorder %s17_s13, %s522_s21  ;;  %p528_p5 = scmp.lt.s32.totalorder %s522_s21, %s522_s21 }
   0xa   :  { %p529_p6 = por %p528_p5, %p527_p4 }
   0xc   :  { %p530_p7 = pnand %p529_p6, %p523_p3 }
   0xe   :  { %533 = shalt.err (!%p530_p7)
}
   0xf   :  { %s537_s22 = smov 128   ;;  %s538_s23 = smov 8  }
  0x10   :  { %22 = dma.hbm_to_vmem [thread:$0]  %s798_s1, 2048, %s17_s13, [#allocation7], %s537_s22, %s537_s22, %s538_s23  }
  0x11   :  { %534 = dma.done.wait [#allocation7], 2048  }
  0x12   :  { %535 = vsyncadd [#allocation7], 4294965248  ;;  %v575_v0 = vld [vmem:[#allocation6 + $0x10] sm:$0xff]  ;;  %v577_v1 = vld [vmem:[#allocation6] sm:$0xff]  ;;  %v539_v34 = vmov 0.0   ;;  %vm540_vm0 = vmmov 0  }
  0x13   :  { %v579_v2 = vld [vmem:[#allocation6 + $0x18] sm:$0xff]  ;;  %v72_v3 = vmul.f32 %v575_v0, %v575_v0  ;;  %v70_v4 = vmul.f32 %v577_v1, %v577_v1  ;;  %v585_v5 = vld [vmem:[#allocation6 + $0x8] sm:$0xff]  ;;  %v593_v9 = vld [vmem:[#allocation6 + $0x20] sm:$0xff]  ;;  %409 = vmatprep.subr.bf16.mxu0 %v539_v34  ;;  %425 = vmatprep.mubr.msk.bf16.mxu0 %vm540_vm0, %v539_v34 }
  0x14   :  { %v73_v6 = vmul.f32 %v579_v2, %v579_v2  ;;  %v71_v7 = vmul.f32 %v585_v5, %v585_v5  ;;  %v591_v8 = vld [vmem:[#allocation6 + $0x28] sm:$0xff]  ;;  %v74_v11 = vmul.f32 %v593_v9, %v593_v9  ;;  %v599_v12 = vld [vmem:[#allocation6 + $0x38] sm:$0xff]  ;;  %v601_v13 = vld [vmem:[#allocation6 + $0x30] sm:$0xff] }
  0x15   :  { %90 = vadd.xlane.f32.xlu1 %v72_v3  ;;  %86 = vadd.xlane.f32.xlu0 %v70_v4  ;;  %v75_v10 = vmul.f32 %v591_v8, %v591_v8  ;;  %v77_v14 = vmul.f32 %v599_v12, %v599_v12  ;;  %v76_v15 = vmul.f32 %v601_v13, %v601_v13  ;;  %v607_v16 = vld [vmem:[#allocation6 + $0x48] sm:$0xff]  ;;  %v609_v17 = vld [vmem:[#allocation6 + $0x40] sm:$0xff]  ;;  %v615_v20 = vld [vmem:[#allocation6 + $0x58] sm:$0xff] }
  0x16   :  { %v79_v18 = vmul.f32 %v607_v16, %v607_v16  ;;  %v78_v19 = vmul.f32 %v609_v17, %v609_v17  ;;  %v617_v21 = vld [vmem:[#allocation6 + $0x50] sm:$0xff]  ;;  %v81_v22 = vmul.f32 %v615_v20, %v615_v20  ;;  %v623_v24 = vld [vmem:[#allocation6 + $0x68] sm:$0xff]  ;;  %v625_v25 = vld [vmem:[#allocation6 + $0x60] sm:$0xff] }
  0x17   :  { %v80_v23 = vmul.f32 %v617_v21, %v617_v21  ;;  %v83_v26 = vmul.f32 %v623_v24, %v623_v24  ;;  %v82_v27 = vmul.f32 %v625_v25, %v625_v25  ;;  %v634_v28 = vld [vmem:[%s797_s0] sm:$0xff]  ;;  %v636_v29 = vld [vmem:[#allocation6 + $0x70] sm:$0xff]  ;;  %v642_v32 = vld [vmem:[#allocation6 + $0x78] sm:$0xff] }
  0x18   :  { %v34_v30 = vmul.f32 %v634_v28, %v634_v28  ;;  %v84_v31 = vmul.f32 %v636_v29, %v636_v29  ;;  %v85_v33 = vmul.f32 %v642_v32, %v642_v32 }
  0x19   :  { %92 = vadd.xlane.f32.xlu1 %v73_v6  ;;  %88 = vadd.xlane.f32.xlu0 %v71_v7 }
  0x1d   :  { %96 = vadd.xlane.f32.xlu1 %v75_v10  ;;  %94 = vadd.xlane.f32.xlu0 %v74_v11 }
  0x21   :  { %100 = vadd.xlane.f32.xlu1 %v77_v14  ;;  %98 = vadd.xlane.f32.xlu0 %v76_v15 }
  0x25   :  { %104 = vadd.xlane.f32.xlu1 %v79_v18  ;;  %102 = vadd.xlane.f32.xlu0 %v78_v19 }
  0x29   :  { %108 = vadd.xlane.f32.xlu1 %v81_v22  ;;  %106 = vadd.xlane.f32.xlu0 %v80_v23 }
  0x2d   :  { %112 = vadd.xlane.f32.xlu1 %v83_v26  ;;  %110 = vadd.xlane.f32.xlu0 %v82_v27 }
  0x31   :  { %35 = vadd.xlane.f32.xlu0 %v34_v30  ;;  %114 = vadd.xlane.f32.xlu1 %v84_v31 }
  0x35   :  { %116 = vadd.xlane.f32.xlu0 %v85_v33 }
  0xa2   :  { %v91_v35 = vpop.xlane.xlu1 %90  ;;  %v87_v36 = vpop.xlane.xlu0 %86 }
  0xa3   :  { %438 = vrsqrt.f32 %v87_v36  ;;  %vm120_vm1 = vcmp.eq.f32.partialorder %v87_v36, inf  ;;  %v123_v51 = vand.u32 2147483648, %v87_v36  ;;  %vm122_vm3 = vcmp.eq.f32.partialorder %v87_v36, 0.0 }
  0xa4   :  { %vm134_vm6 = vcmp.eq.f32.partialorder %v91_v35, inf  ;;  %v137_v6 = vand.u32 2147483648, %v91_v35  ;;  %vm136_vm8 = vcmp.eq.f32.partialorder %v91_v35, 0.0 }
  0xa6   :  { %v93_v37 = vpop.xlane.xlu1 %92  ;;  %v89_v38 = vpop.xlane.xlu0 %88 }
  0xa7   :  { %440 = vrsqrt.f32 %v93_v37  ;;  %vm127_vm2 = vcmp.eq.f32.partialorder %v89_v38, inf  ;;  %v130_v55 = vand.u32 2147483648, %v89_v38  ;;  %vm129_vm4 = vcmp.eq.f32.partialorder %v89_v38, 0.0 }
  0xa8   :  { %442 = vrsqrt.f32 %v89_v38  ;;  %vm141_vm5 = vcmp.eq.f32.partialorder %v93_v37, inf  ;;  %v144_v3 = vand.u32 2147483648, %v93_v37  ;;  %vm143_vm7 = vcmp.eq.f32.partialorder %v93_v37, 0.0 }
  0xa9   :  { %444 = vrsqrt.f32 %v91_v35 }
  0xaa   :  { %v648_v39 = vpop.xlane.xlu1 %96  ;;  %v650_v40 = vpop.xlane.xlu0 %94 }
  0xab   :  { %446 = vrsqrt.f32 %v648_v39  ;;  %vm155_vm9 = vcmp.eq.f32.partialorder %v648_v39, inf  ;;  %vm148_vm10 = vcmp.eq.f32.partialorder %v650_v40, inf  ;;  %vm157_vm11 = vcmp.eq.f32.partialorder %v648_v39, 0.0 }
  0xac   :  { %448 = vrsqrt.f32 %v650_v40  ;;  %v158_v22 = vand.u32 2147483648, %v648_v39  ;;  %v151_v30 = vand.u32 2147483648, %v650_v40  ;;  %vm150_vm12 = vcmp.eq.f32.partialorder %v650_v40, 0.0 }
  0xad   :  { %v439_v41 = vpop.eup %438 }
  0xae   :  { %v119_v42 = vmul.f32 %v439_v41, %v87_v36  ;;  %v654_v43 = vpop.xlane.xlu0 %98  ;;  %v656_v48 = vpop.xlane.xlu1 %100 }
  0xaf   :  { %450 = vrsqrt.f32 %v656_v48  ;;  %vm169_vm13 = vcmp.eq.f32.partialorder %v656_v48, inf  ;;  %vm162_vm14 = vcmp.eq.f32.partialorder %v654_v43, inf  ;;  %vm171_vm15 = vcmp.eq.f32.partialorder %v656_v48, 0.0 }
  0xb0   :  { %v121_v49 = vsel %vm120_vm1, %v87_v36, %v119_v42  ;;  %452 = vrsqrt.f32 %v654_v43  ;;  %vm164_vm0 = vcmp.eq.f32.partialorder %v654_v43, 0.0 }
  0xb1   :  { %v441_v44 = vpop.eup %440  ;;  %v124_v56 = vsel %vm122_vm3, %v123_v51, %v121_v49 }
  0xb2   :  { %v443_v45 = vpop.eup %442  ;;  %v658_v50 = vpop.xlane.xlu0 %102  ;;  %v140_v52 = vmul.f32 %v441_v44, %v93_v37  ;;  %v230_v63 = vmax.f32 %v124_v56, 1e-12 }
  0xb3   :  { %v445_v46 = vpop.eup %444  ;;  %v126_v47 = vmul.f32 %v443_v45, %v89_v38  ;;  %v664_v4 = vpop.xlane.xlu1 %104  ;;  %v172_v45 = vand.u32 2147483648, %v656_v48  ;;  %vm176_vm3 = vcmp.eq.f32.partialorder %v658_v50, inf }
  0xb4   :  { %v133_v54 = vmul.f32 %v445_v46, %v91_v35  ;;  %v142_v60 = vsel %vm141_vm5, %v93_v37, %v140_v52  ;;  %454 = vrsqrt.f32 %v664_v4  ;;  %v165_v46 = vand.u32 2147483648, %v654_v43 }
  0xb5   :  { %v128_v53 = vsel %vm127_vm2, %v89_v38, %v126_v47  ;;  %v447_v59 = vpop.eup %446  ;;  %v145_v10 = vsel %vm143_vm7, %v144_v3, %v142_v60  ;;  %456 = vrcp.f32 %v230_v63  ;;  %vm183_vm1 = vcmp.eq.f32.partialorder %v664_v4, inf }
  0xb6   :  { %v131_v57 = vsel %vm129_vm4, %v130_v55, %v128_v53  ;;  %v662_v58 = vpop.xlane.xlu0 %106  ;;  %v449_v61 = vpop.eup %448  ;;  %v135_v62 = vsel %vm134_vm6, %v91_v35, %v133_v54  ;;  %v154_v11 = vmul.f32 %v447_v59, %v648_v39  ;;  %v233_v19 = vmax.f32 %v145_v10, 1e-12 }
  0xb7   :  { %v231_v7 = vmax.f32 %v131_v57, 1e-12  ;;  %v138_v15 = vsel %vm136_vm8, %v137_v6, %v135_v62  ;;  %v147_v18 = vmul.f32 %v449_v61, %v650_v40  ;;  %vm185_vm2 = vcmp.eq.f32.partialorder %v664_v4, 0.0 }
  0xb8   :  { %v232_v26 = vmax.f32 %v138_v15, 1e-12  ;;  %v156_v27 = vsel %vm155_vm9, %v648_v39, %v154_v11  ;;  %v684_v39 = vpop.xlane.xlu1 %108  ;;  %v186_v62 = vand.u32 2147483648, %v664_v4  ;;  %vm178_vm6 = vcmp.eq.f32.partialorder %v658_v50, 0.0 }
  0xb9   :  { %458 = vrcp.f32 %v231_v7  ;;  %v451_v23 = vpop.eup %450  ;;  %v149_v33 = vsel %vm148_vm10, %v650_v40, %v147_v18  ;;  %v159_v36 = vsel %vm157_vm11, %v158_v22, %v156_v27  ;;  %vm197_vm7 = vcmp.eq.f32.partialorder %v684_v39, inf }
  0xba   :  { %v667_v14 = vpop.xlane.xlu0 %110  ;;  %460 = vrsqrt.f32 %v658_v50  ;;  %v453_v31 = vpop.eup %452  ;;  %v152_v37 = vsel %vm150_vm12, %v151_v30, %v149_v33  ;;  %v168_v38 = vmul.f32 %v451_v23, %v656_v48  ;;  %v235_v42 = vmax.f32 %v159_v36, 1e-12 }
  0xbb   :  { %462 = vrcp.f32 %v233_v19  ;;  %v161_v41 = vmul.f32 %v453_v31, %v654_v43  ;;  %v234_v44 = vmax.f32 %v152_v37, 1e-12  ;;  %vm199_vm8 = vcmp.eq.f32.partialorder %v684_v39, 0.0 }
  0xbc   :  { %464 = vrcp.f32 %v232_v26  ;;  %v170_v49 = vsel %vm169_vm13, %v656_v48, %v168_v38  ;;  %v179_v48 = vand.u32 2147483648, %v658_v50  ;;  %vm190_vm9 = vcmp.eq.f32.partialorder %v662_v58, inf }
  0xbd   :  { %v163_v51 = vsel %vm162_vm14, %v654_v43, %v161_v41  ;;  %v173_v56 = vsel %vm171_vm15, %v172_v45, %v170_v49  ;;  %v703_v43 = vpop.xlane.xlu1 %112  ;;  %vm192_vm10 = vcmp.eq.f32.partialorder %v662_v58, 0.0  ;;  %vm204_vm12 = vcmp.eq.f32.partialorder %v667_v14, inf }
  0xbe   :  { %v680_v35 = vpop.xlane.xlu0 %35  ;;  %v455_v40 = vpop.eup %454  ;;  %v166_v57 = vsel %vm164_vm0, %v165_v46, %v163_v51  ;;  %v237_v63 = vmax.f32 %v173_v56, 1e-12  ;;  %vm211_vm11 = vcmp.eq.f32.partialorder %v703_v43, inf  ;;  %vm213_vm13 = vcmp.eq.f32.partialorder %v703_v43, 0.0 }
  0xbf   :  { %466 = vrsqrt.f32 %v680_v35  ;;  %v457_v47 = vpop.eup %456  ;;  %v182_v59 = vmul.f32 %v455_v40, %v664_v4  ;;  %v236_v3 = vmax.f32 %v166_v57, 1e-12  ;;  %vm39_vm4 = vcmp.eq.f32.partialorder %v680_v35, inf }
  0xc0   :  { %468 = vrsqrt.f32 %v684_v39  ;;  %v278_v54 = vmul.f32 %v457_v47, %v577_v1  ;;  %v42_v10 = vand.u32 2147483648, %v680_v35  ;;  %vm41_vm5 = vcmp.eq.f32.partialorder %v680_v35, 0.0 }
  0xc1   :  { %470 = vrsqrt.f32 %v662_v58  ;;  %v184_v7 = vsel %vm183_vm1, %v664_v4, %v182_v59  ;;  %v726_v38 = vpop.xlane.xlu1 %114  ;;  %v193_v40 = vand.u32 2147483648, %v662_v58  ;;  %vm206_vm14 = vcmp.eq.f32.partialorder %v667_v14, 0.0 }
  0xc2   :  { %472 = vrcp.f32 %v235_v42  ;;  %v187_v27 = vsel %vm185_vm2, %v186_v62, %v184_v7  ;;  %v730_v41 = vpop.xlane.xlu0 %116  ;;  %v200_v42 = vand.u32 2147483648, %v684_v39  ;;  %vm218_vm15 = vcmp.eq.f32.partialorder %v726_v38, inf }
  0xc3   :  { %v459_v52 = vpop.eup %458  ;;  %474 = vrcp.f32 %v234_v44  ;;  %vm225_vm0 = vcmp.eq.f32.partialorder %v730_v41, inf  ;;  %vm220_vm1 = vcmp.eq.f32.partialorder %v726_v38, 0.0  ;;  %vm227_vm2 = vcmp.eq.f32.partialorder %v730_v41, 0.0 }
  0xc4   :  { %v461_v53 = vpop.eup %460  ;;  %v279_v55 = vmul.f32 %v459_v52, %v585_v5  ;;  %476 = vrsqrt.f32 %v703_v43 }
  0xc5   :  { %v463_v61 = vpop.eup %462  ;;  %v175_v1 = vmul.f32 %v461_v53, %v658_v50  ;;  %478 = vrsqrt.f32 %v667_v14 }
  0xc6   :  { %v294_v60 = vpack.c.bf16 %v279_v55, %v278_v54  ;;  %v465_v5 = vpop.eup %464  ;;  %v281_v15 = vmul.f32 %v463_v61, %v579_v2  ;;  %480 = vrcp.f32 %v237_v63  ;;  %v207_v61 = vand.u32 2147483648, %v667_v14 }
  0xc7   :  { %v177_v19 = vsel %vm176_vm3, %v658_v50, %v175_v1  ;;  %v280_v26 = vmul.f32 %v465_v5, %v575_v0  ;;  %482 = vrcp.f32 %v236_v3  ;;  %v239_v0 = vmax.f32 %v187_v27, 1e-12 }
  0xc8   :  { %410 = vmatpush3.bf16.xpose.msra.mxu0 %v294_v60  ;;  %v180_v33 = vsel %vm178_vm6, %v179_v48, %v177_v19  ;;  %vm50_vm3 = vcmask 7168  }
  0xc9   :  { %v467_v6 = vpop.eup %466  ;;  %411 = vmatprep.subr.bf16.mxu0 %v539_v34  ;;  %v295_v37 = vpack.c.bf16 %v281_v15, %v280_v26  ;;  %v238_v4 = vmax.f32 %v180_v33, 1e-12  ;;  %52 = vst.msk [vmem:[#allocation4] sm:$0xff] %vm50_vm3, %v539_v34  ;;  %53 = vst.msk [vmem:[#allocation5] sm:$0xff] %vm50_vm3, %v539_v34 }
  0xca   :  { %v38_v11 = vmul.f32 %v467_v6, %v680_v35  ;;  %v469_v18 = vpop.eup %468 }
  0xcb   :  { %v471_v22 = vpop.eup %470  ;;  %v196_v2 = vmul.f32 %v469_v18, %v684_v39 }
  0xcc   :  { %v40_v23 = vsel %vm39_vm4, %v680_v35, %v38_v11  ;;  %v473_v31 = vpop.eup %472  ;;  %v189_v35 = vmul.f32 %v471_v22, %v662_v58 }
  0xcd   :  { %v43_v30 = vsel %vm41_vm5, %v42_v10, %v40_v23  ;;  %v475_v50 = vpop.eup %474  ;;  %v198_v44 = vsel %vm197_vm7, %v684_v39, %v196_v2  ;;  %v283_v46 = vmul.f32 %v473_v31, %v591_v8  ;;  %v214_v39 = vand.u32 2147483648, %v703_v43 }
  0xce   :  { %v44_v36 = vmax.f32 %v43_v30, 1e-12  ;;  %v282_v45 = vmul.f32 %v475_v50, %v593_v9  ;;  %v477_v47 = vpop.eup %476  ;;  %v191_v49 = vsel %vm190_vm9, %v662_v58, %v189_v35  ;;  %v201_v52 = vsel %vm199_vm8, %v200_v42, %v198_v44 }
  0xcf   :  { %v479_v51 = vpop.eup %478  ;;  %v194_v54 = vsel %vm192_vm10, %v193_v40, %v191_v49  ;;  %v210_v55 = vmul.f32 %v477_v47, %v703_v43  ;;  %v241_v9 = vmax.f32 %v201_v52, 1e-12  ;;  %v228_v23 = vand.u32 2147483648, %v730_v41 }
  0xd0   :  { %484 = vrcp.f32 %v44_v36  ;;  %412 = vmatpush3.bf16.xpose.msra.mxu0 %v295_v37  ;;  %v481_v53 = vpop.eup %480  ;;  %v296_v56 = vpack.c.bf16 %v283_v46, %v282_v45  ;;  %v203_v8 = vmul.f32 %v479_v51, %v667_v14  ;;  %v240_v58 = vmax.f32 %v194_v54, 1e-12 }
  0xd1   :  { %486 = vrsqrt.f32 %v726_v38  ;;  %413 = vmatprep.subr.bf16.mxu0 %v539_v34  ;;  %v483_v57 = vpop.eup %482  ;;  %v212_v60 = vsel %vm211_vm11, %v703_v43, %v210_v55  ;;  %v285_v1 = vmul.f32 %v481_v53, %v599_v12  ;;  %v541_v49 = vmov 0   ;;  %v350_v55 = vld [vmem:[%s799_s2] sm:$0xff] }
  0xd2   :  { %488 = vrsqrt.f32 %v730_v41  ;;  %v284_v62 = vmul.f32 %v483_v57, %v601_v13  ;;  %v205_v63 = vsel %vm204_vm12, %v667_v14, %v203_v8  ;;  %v215_v6 = vsel %vm213_vm13, %v214_v39, %v212_v60  ;;  %437 = vset.pattern.permute.xlu1 %v541_v49  ;;  %436 = vset.pattern.permute.xlu0 %v541_v49 }
  0xd3   :  { %490 = vrcp.f32 %v239_v0  ;;  %v208_v43 = vsel %vm206_vm14, %v207_v61, %v205_v63  ;;  %v243_v19 = vmax.f32 %v215_v6, 1e-12 }
  0xd4   :  { %492 = vrcp.f32 %v238_v4  ;;  %v297_v15 = vpack.c.bf16 %v285_v1, %v284_v62  ;;  %v242_v14 = vmax.f32 %v208_v43, 1e-12  ;;  %v351_v62 = vld [vmem:[#allocation5] sm:$0xff] }
  0xd5   :  { %494 = vrcp.f32 %v241_v9 }
  0xd6   :  { %496 = vrcp.f32 %v240_v58 }
  0xd7   :  { %498 = vrcp.f32 %v243_v19 }
  0xd8   :  { %414 = vmatpush3.bf16.xpose.msra.mxu0 %v296_v56  ;;  %500 = vrcp.f32 %v242_v14 }
  0xd9   :  { %415 = vmatprep.subr.bf16.mxu0 %v539_v34 }
  0xda   :  { %v485_v59 = vpop.eup %484 }
  0xdb   :  { %v487_v5 = vpop.eup %486  ;;  %v46_v3 = vmul.f32 2.0, %v485_v59 }
  0xdc   :  { %v489_v48 = vpop.eup %488  ;;  %v217_v11 = vmul.f32 %v487_v5, %v726_v38 }
  0xdd   :  { %v47_v7 = vmul.f32 %v46_v3, %v634_v28  ;;  %v491_v10 = vpop.eup %490  ;;  %v224_v12 = vmul.f32 %v489_v48, %v730_v41  ;;  %v221_v28 = vand.u32 2147483648, %v726_v38  ;;  %v369_v48 = vld [vmem:[#allocation4] sm:$0xff] }
  0xde   :  { %v493_v13 = vpop.eup %492  ;;  %v219_v22 = vsel %vm218_vm15, %v726_v38, %v217_v11  ;;  %v287_v27 = vmul.f32 %v491_v10, %v607_v16 }
  0xdf   :  { %v48_v18 = vpack.c.bf16 %v47_v7, %v47_v7  ;;  %v286_v26 = vmul.f32 %v493_v13, %v609_v17  ;;  %v226_v30 = vsel %vm225_vm0, %v730_v41, %v224_v12  ;;  %v222_v31 = vsel %vm220_vm1, %v221_v28, %v219_v22  ;;  %v495_v33 = vpop.eup %494 }
  0xe0   :  { %416 = vmatpush3.bf16.xpose.msra.mxu0 %v297_v15  ;;  %v229_v2 = vsel %vm227_vm2, %v228_v23, %v226_v30  ;;  %v497_v37 = vpop.eup %496  ;;  %v244_v50 = vmax.f32 %v222_v31, 1e-12  ;;  %v289_v16 = vmul.f32 %v495_v33, %v615_v20 }
  0xe1   :  { %49 = vst [vmem:[#allocation2] sm:$0xf] %v48_v18  ;;  %417 = vmatprep.subr.bf16.mxu0 %v539_v34  ;;  %v298_v36 = vpack.c.bf16 %v287_v27, %v286_v26  ;;  %v245_v38 = vmax.f32 %v229_v2, 1e-12  ;;  %v288_v17 = vmul.f32 %v497_v37, %v617_v21  ;;  %v499_v35 = vpop.eup %498 }
  0xe2   :  { %502 = vrcp.f32 %v244_v50  ;;  %v501_v0 = vpop.eup %500  ;;  %v291_v42 = vmul.f32 %v499_v35, %v623_v24  ;;  %v343_v24 = vlaneseq }
  0xe3   :  { %504 = vrcp.f32 %v245_v38  ;;  %v299_v41 = vpack.c.bf16 %v289_v16, %v288_v17  ;;  %v290_v4 = vmul.f32 %v501_v0, %v625_v25  ;;  %v542_v25 = vmov -inf  }
  0xe4   :  { %51 = vst.msk [vmem:[#allocation3] sm:$0xff] %vm50_vm3, %v542_v25 }
  0xe5   :  { %v300_v44 = vpack.c.bf16 %v291_v42, %v290_v4 }
  0xe8   :  { %418 = vmatpush3.bf16.xpose.msra.mxu0 %v298_v36  ;;  %v302_v47 = vld [vmem:[#allocation2] sm:$0xf] }
  0xe9   :  { %419 = vmatprep.subr.bf16.mxu0 %v539_v34 }
  0xeb   :  { %v362_v56 = vld [vmem:[#allocation3] sm:$0xff] }
  0xec   :  { %v503_v40 = vpop.eup %502 }
  0xed   :  { %v505_v45 = vpop.eup %504  ;;  %v292_v20 = vmul.f32 %v503_v40, %v636_v29  ;;  %v344_v29 = vand.u32 127, %v343_v24 }
  0xee   :  { %v293_v21 = vmul.f32 %v505_v45, %v642_v32 }
  0xef   :  { %vm348_vm4 = vcmp.lt.s32.totalorder %v344_v29, 16 }
  0xf0   :  { %420 = vmatpush3.bf16.xpose.msra.mxu0 %v299_v41  ;;  %v301_v46 = vpack.c.bf16 %v293_v21, %v292_v20 }
  0xf1   :  { %421 = vmatprep.subr.bf16.mxu0 %v539_v34 }
  0xf8   :  { %422 = vmatpush3.bf16.xpose.msra.mxu0 %v300_v44 }
  0xf9   :  { %423 = vmatprep.subr.bf16.mxu0 %v539_v34 }
 0x100   :  { %424 = vmatpush3.bf16.xpose.msra.mxu0 %v301_v46 }
 0x107   :  { %426 = vmatmul.mubr.bf16.vlgmr.msra.gmra.mrb[0].mxu0 %v302_v47 }
 0x1da   :  { %v337_v32 = vpop.f32.mrb[0].mxu0 }
 0x1db   :  { %v349_v51 = vsel %vm348_vm4, %v337_v32, -1e+30  ;;  %v427_v52 = vpop.f32.mrb[1].mxu0 }
 0x1dc   :  { %363 = vmax.xlane.f32.xlu1 %v349_v51  ;;  %v340_v53 = vpop.f32.mrb[2].mxu0 }
 0x1dd   :  { %v428_v54 = vpop.f32.mrb[3].mxu0 }
 0x1ed   :  { %353 = vperm.xlu1 %437, %v350_v55  }
 0x269   :  { %v364_v57 = vpop.xlane.xlu1 %363 }
 0x26a   :  { %v365_v8 = vmax.f32 %v362_v56, %v364_v57 }
 0x26c   :  { %v366_v9 = vsub.f32 %v362_v56, %v365_v8  ;;  %383 = vst.msk [vmem:[#allocation3] sm:$0xff] %vm50_vm3, %v365_v8  ;;  %373 = vperm.xlu0 %436, %v365_v8  }
 0x26d   :  { %v354_v34 = vpop.permute.xlu1 %353 }
 0x26e   :  { %vm355_vm5 = vcmp.eq.s32.totalorder %v344_v29, %v354_v34  ;;  %v367_v63 = vmul.f32 1.442695, %v366_v9 }
 0x26f   :  { %v356_v58 = vsel %vm355_vm5, %v349_v51, 0.0 }
 0x273   :  { %v387_v13 = vld [vmem:[#allocation3] sm:$0xff] }
 0x28b   :  { %357 = vadd.xlane.f32.xlu0 %v356_v58 }
 0x2eb   :  { %v374_v39 = vpop.permute.xlu0 %373 }
 0x2ec   :  { %v376_v59 = vsub.f32 %v349_v51, %v374_v39 }
 0x2ee   :  { %v377_v60 = vmul.f32 1.442695, %v376_v59 }
 0x2f0   :  { %506 = vpow2.f32 %v377_v60 }
 0x2f1   :  { %508 = vpow2.f32 %v367_v63 }
 0x2fa   :  { %v507_v61 = vpop.eup %506 }
 0x2fb   :  { %379 = vadd.xlane.f32.xlu1 %v507_v61  ;;  %v509_v3 = vpop.eup %508 }
 0x2fc   :  { %v370_v6 = vmul.f32 %v509_v3, %v369_v48 }
 0x318   :  { %v358_v1 = vpop.xlane.xlu0 %357 }
 0x319   :  { %v359_v5 = vadd.f32 %v358_v1, %v351_v62 }
 0x31b   :  { %361 = vst.msk [vmem:[#allocation5] sm:$0xff] %vm50_vm3, %v359_v5 }
 0x322   :  { %v392_v12 = vld [vmem:[#allocation5] sm:$0xff] }
 0x388   :  { %v380_v7 = vpop.xlane.xlu1 %379 }
 0x389   :  { %v381_v10 = vadd.f32 %v380_v7, %v370_v6 }
 0x38b   :  { %382 = vst.msk [vmem:[#allocation4] sm:$0xff] %vm50_vm3, %v381_v10 }
 0x392   :  { %v388_v43 = vld [vmem:[#allocation4] sm:$0xff] }
 0x393   :  { %510 = vlog2.f32 %v388_v43 }
 0x39d   :  { %v511_v11 = vpop.eup %510 }
 0x39e   :  { %v390_v15 = vmul.f32 0.6931472, %v511_v11 }
 0x3a0   :  { %v391_v18 = vadd.f32 %v390_v15, %v387_v13 }
 0x3a2   :  { %v393_v19 = vsub.f32 %v391_v18, %v392_v12 }
 0x3a4   :  { %394 = vst.msk [vmem:[%s800_s3] sm:$0xff] %vm50_vm3, %v393_v19 }
 0x3a5   :  { %399 = vsyncpa [#allocation7], 1 }

</bundles_post_ra>
